<compile_context>
chip_gen: v6e
topology: v6e:2x2x1
jax: 0.10.0
libtpu: 0.0.40
codegen_flags: <defaults>
</compile_context>

<pallas_src>
import jax
import jax.numpy as jnp
from jax.experimental import pallas as pl
from jax.experimental.pallas import tpu as pltpu


def _normalize_kernel(audio_ref, out_ref):
    x = audio_ref[...]                                     # (tb, L), native dtype
    # min/max are exact in any float width -> reduce in the native dtype so no
    # whole-tile f32 temporary is materialized (keeps bf16 tiles packed 16x128).
    max_v = jnp.max(x, axis=1, keepdims=True)              # (tb, 1)
    min_v = jnp.min(x, axis=1, keepdims=True)              # (tb, 1)
    # Exact per-row scale: a handful of ops on (tb, 1) scalars, completely off
    # the per-element critical path (no approx reciprocal -> matches torch's
    # exact divide to within a couple of ulps).
    rng = max_v.astype(jnp.float32) - min_v.astype(jnp.float32) + 1e-10
    scale = 2.0 / rng                                      # (tb, 1) f32

    dt = out_ref.dtype
    if dt == jnp.float32:
        out_ref[...] = (x - min_v) * scale - 1.0
    elif jnp.issubdtype(dt, jnp.floating):
        # Keep the elementwise path packed in the native width (bf16/f16 on
        # v6e/v7x): sub + mul + sub per element, no widening / re-narrowing.
        out_ref[...] = ((x - min_v) * scale.astype(dt) - 1.0).astype(dt)
    else:
        xf = x.astype(jnp.float32)
        out_ref[...] = ((xf - min_v.astype(jnp.float32)) * scale - 1.0).astype(dt)


def _round_up(x: int, m: int) -> int:
    return ((x + m - 1) // m) * m


def _round_down(x: int, m: int) -> int:
    return (x // m) * m


# Fallback VMEM capacity if the hardware query is unavailable: v7x worst case
# (64 MiB); v5e/v6e (128 MiB) are detected at runtime and get bigger tiles.
_FALLBACK_VMEM_CAPACITY = 64 * 1024 * 1024


def _vmem_capacity_bytes() -> int:
    try:
        return int(pltpu.get_tpu_info().vmem_capacity_bytes)
    except Exception:
        return _FALLBACK_VMEM_CAPACITY


def normalize(audio: jax.Array) -> jax.Array:
    """Scale each row of `audio` to lie in [-1, 1] (matches Normalize.forward)."""
    if audio.ndim != 2:
        raise ValueError("Audio should be 2D: [batch_size X audio_length]")
    if audio.shape[1] < 1:
        raise ValueError("Audio length is zero")

    B, L = audio.shape
    itemsize = jnp.dtype(audio.dtype).itemsize
    # Sublane packing: rows per vreg (f32: 8, bf16: 16, int8/fp8: 32).
    pack = max(8, 32 // itemsize)

    # Generation-aware VMEM budget: ~0.35x capacity for the double-buffered
    # in+out tiles, cap the Mosaic limit at ~0.75x to leave internal headroom.
    capacity = _vmem_capacity_bytes()
    tile_budget = int(capacity * 0.35)
    vmem_cap = int(capacity * 0.75)

    # Largest pack-aligned batch tile whose double-buffered in+out footprint
    # fits the budget (no separate f32 working tile is needed anymore).
    bytes_per_row = 4 * L * itemsize              # 2 bufs x (in + out)
    tb_max = _round_down(tile_budget // bytes_per_row, pack)
    if tb_max < pack:
        # TODO(synk): rows too long for a (pack, L) double-buffered tile need a
        # two-pass L-tiled reduce + rescale variant; not required at these sizes.
        tb_max = pack

    b_ceil = _round_up(B, pack)
    tb = min(tb_max, b_ceil)
    if tb >= b_ceil:
        # Whole batch fits one block: split so v7x's two TensorCores each get
        # >=2 grid steps (DMA/compute overlap); fall back to 2 steps, then 1.
        for steps in (4, 2):
            cand = _round_down(b_ceil // steps, pack)
            if cand >= pack:
                tb = cand
                break

    # Ragged last block: OOB rows are read as garbage (harmless for a strictly
    # per-row op) and their writes are masked, so no pad / final slice needed.
    grid = (pl.cdiv(B, tb),)

    footprint = 4 * tb * L * itemsize             # double-buffered in + out
    vmem_limit = min(max(int(footprint * 1.5), 16 * 1024 * 1024), vmem_cap)

    return pl.pallas_call(
        _normalize_kernel,
        out_shape=jax.ShapeDtypeStruct((B, L), audio.dtype),
        grid_spec=pltpu.PrefetchScalarGridSpec(
            num_scalar_prefetch=0,
            grid=grid,
            in_specs=[pl.BlockSpec((tb, L), lambda i: (i, 0))],
            out_specs=pl.BlockSpec((tb, L), lambda i: (i, 0)),
        ),
        compiler_params=pltpu.CompilerParams(
            dimension_semantics=("parallel",),
            vmem_limit_bytes=vmem_limit,
        ),
        cost_estimate=pl.CostEstimate(
            flops=3 * B * L,
            transcendentals=0,
            bytes_accessed=2 * B * L * itemsize,
        ),
    )(audio)


def _reference(a: jax.Array) -> jax.Array:
    max_v = jnp.max(a, axis=1, keepdims=True)
    min_v = jnp.min(a, axis=1, keepdims=True)
    return (a - min_v) / (max_v - min_v + 1e-10) * 2.0 - 1.0


if __name__ == "__main__":
    key0, key1 = jax.random.split(jax.random.PRNGKey(0))

    # Tile-aligned case.
    B, L = 16, 256
    audio = jax.random.normal(key0, (B, L), dtype=jnp.float32) * 3.0 + 0.5
    out = normalize(audio)
    jax.block_until_ready(out)
    assert out.shape == audio.shape and out.dtype == audio.dtype
    assert jnp.allclose(out, _reference(audio), atol=1e-5), "mismatch vs reference"

    # Ragged batch (B not a multiple of the tile) exercises the masked last block.
    B2, L2 = 13, 384
    audio2 = jax.random.normal(key1, (B2, L2), dtype=jnp.float32) * 2.0 - 1.5
    out2 = normalize(audio2)
    jax.block_until_ready(out2)
    assert out2.shape == audio2.shape and out2.dtype == audio2.dtype
    assert jnp.allclose(out2, _reference(audio2), atol=1e-5), "ragged mismatch"

    print("KERNEL_OK")
</pallas_src>

<mosaic_0001>
module attributes {stable_mosaic.version = 11 : i64} {
  func.func @_normalize_kernel(%arg0: i32, %arg1: memref<8x256xf32, #tpu.memory_space<vmem>>, %arg2: memref<8x256xf32, #tpu.memory_space<vmem>>) attributes {dimension_semantics = [#tpu.dimension_semantics<parallel>], iteration_bounds = array<i64: 2>, scalar_prefetch = 0 : i64, scratch_operands = 0 : i64, tpu.core_type = #tpu.core_type<tc>, window_params = [{transform_indices = @transform_0, window_bounds = array<i64: 8, 256>}, {transform_indices = @transform_1, window_bounds = array<i64: 8, 256>}]} {
    %c0 = arith.constant 0 : index
    %c0_0 = arith.constant 0 : index
    %0 = vector.load %arg1[%c0, %c0_0] : memref<8x256xf32, #tpu.memory_space<vmem>>, vector<8x256xf32>
    %cst = arith.constant dense<0xFF800000> : vector<8xf32>
    %1 = vector.multi_reduction <maximumf>, %0, %cst [1] : vector<8x256xf32> to vector<8xf32>
    %2 = vector.shape_cast %1 : vector<8xf32> to vector<8x1xf32>
    %cst_1 = arith.constant dense<0x7F800000> : vector<8xf32>
    %3 = vector.multi_reduction <minimumf>, %0, %cst_1 [1] : vector<8x256xf32> to vector<8xf32>
    %4 = vector.shape_cast %3 : vector<8xf32> to vector<8x1xf32>
    %5 = arith.subf %2, %4 : vector<8x1xf32>
    %cst_2 = arith.constant 1.000000e-10 : f32
    %6 = vector.broadcast %cst_2 : f32 to vector<8x1xf32>
    %7 = arith.addf %5, %6 : vector<8x1xf32>
    %cst_3 = arith.constant 2.000000e+00 : f32
    %8 = vector.broadcast %cst_3 : f32 to vector<8x1xf32>
    %9 = arith.divf %8, %7 : vector<8x1xf32>
    %10 = vector.broadcast %4 : vector<8x1xf32> to vector<8x256xf32>
    %11 = arith.subf %0, %10 : vector<8x256xf32>
    %12 = vector.broadcast %9 : vector<8x1xf32> to vector<8x256xf32>
    %13 = arith.mulf %11, %12 : vector<8x256xf32>
    %cst_4 = arith.constant 1.000000e+00 : f32
    %14 = vector.broadcast %cst_4 : f32 to vector<8x256xf32>
    %15 = arith.subf %13, %14 : vector<8x256xf32>
    %c0_5 = arith.constant 0 : index
    %c0_6 = arith.constant 0 : index
    %16 = vector.load %arg2[%c0_5, %c0_6] : memref<8x256xf32, #tpu.memory_space<vmem>>, vector<8x256xf32>
    tpu.vector_store %arg2[%c0_5, %c0_6], %15 {strides = array<i32>} : memref<8x256xf32, #tpu.memory_space<vmem>>, vector<8x256xf32>,
    return
  }
  func.func @transform_0(%arg0: i32) -> (i32, i32) {
    %c0_i32 = arith.constant 0 : i32
    %c0_i32_0 = arith.constant 0 : i32
    return %arg0, %c0_i32 : i32, i32
  }
  func.func @transform_1(%arg0: i32) -> (i32, i32) {
    %c0_i32 = arith.constant 0 : i32
    %c0_i32_0 = arith.constant 0 : i32
    return %arg0, %c0_i32 : i32, i32
  }
}

</mosaic_0001>

<bundles_post_ra>
// kernel: tpu_custom_call.1
= control target key start
LH: loop header
LB: loop body
LE: loop exit
PB: predicated region body
PF: predicated region fallthrough
CT: control target
= control target key end

     0   :  { %6 = vsyncpa [#allocation3], 0  ;;  %s557_s0 = inlined_call_operand.hbm [shape: f32[16,256], index: 0, kind: input, shape index: {}]   ;;  %s558_s1 = inlined_call_operand.hbm [shape: f32[16,256], index: 1, kind: output, shape index: {}]  }
   0x1   :  { %8 = vsyncpa [#allocation3 + $0x1], 0 }
   0x2   :  { %9 = vsyncpa [#allocation4], 0 }
   0x3   :  { %11 = vsyncpa [#allocation4 + $0x1], 0  ;;  %s410_s6 = smov 0   ;;  %s412_s7 = smov 0  }
   0x4   :  { %s414_s8 = smov 0   ;;  %s416_s9 = smov 0  }
   0x5 LB: > { %s431_s10 = sadd.s32 4294967295, %s396_s9   ;;  %s238_s11 = sadd.s32 4294967294, %s396_s9   ;;  %s396_s9 = sphi %s416_s9, %s575_s9   ;;  %s392_s8 = sphi %s414_s8, %s574_s8   ;;  %s388_s7 = sphi %s412_s7, %s573_s7   ;;  %s384_s6 = sphi %s410_s6, %s572_s6  }
   0x6   : > { %s435_s12 = sadd.s32 1, %s396_s9   ;;  %s24_s13 = sadd.s32 1, %s392_s8 }
   0x7   : > { %s21_s14 = ssub.s32 %s396_s9, %s435_s12  ;;  %p31_p0 = scmp.ne.s32.totalorder %s392_s8, %s388_s7 }
   0x8   : > { %p22_p1 = scmp.eq.s32.totalorder %s21_s14, 0  ;;  %p32_p2 = scmp.eq.s32.totalorder %s396_s9, 0 }
   0x9   : > { %p37_p3 = scmp.ne.s32.totalorder %s388_s7, %s384_s6  ;;  %p38_p4 = scmp.eq.s32.totalorder %s431_s10, 0 }
   0xa   : > { %s447_s15 = scalar_select %p22_p1, %s392_s8, %s24_s13  }
   0xb   : > { %p449_p5 = por %p32_p2, %p31_p0  ;;  %p453_p6 = por %p38_p4, %p37_p3 }
   0xc   : > { %p61_p7 = scmp.eq.s32.totalorder %s431_s10, 1  ;;  %p67_p8 = scmp.eq.s32.totalorder %s238_s11, 1 }
   0xd   : > { %s562_s17 = scalar_select %p453_p6, 1, 0 }
   0xe   : > { %p268_p10 = scmp.lt.s32.totalorder %s396_s9, 2  ;;  %p460_p11 = por %p61_p7, %p31_p0 }
   0xf   : > { %p464_p12 = por %p67_p8, %p37_p3  ;;  %s87_s20 = sand.u32 1, %s392_s8  }
  0x10   : > { %s563_s18 = scalar_select %p460_p11, 1, 0 }
  0x11   : > { %s564_s19 = scalar_select %p464_p12, 1, 0 }
  0x12   : > { %s254_s21 = sshll.u32 %s396_s9, 8  ;;  %s241_s22 = sshll.u32 %s87_s20, 4 }
  0x13   : > { %s473_s25 = scalar_lea.hbm %s557_s0, %s254_s21  ;;  %s91_s26 = scalar_lea.vmem [#allocation2], %s241_s22 }
  0x14   : > { %s99_s27 = sshll.u32 %s91_s26, 4  ;;  %p477_p13 = pnand %p268_p10, %p449_p5  ;;  %s481_s27 = int_to_ptr.vmem [resolvable:$true] %s99_s27 }
  0x15   : > { %s88_s29 = scalar_lea.sflag [#allocation3], %s87_s20  ;;  %s304_s30 = scalar_lea.hbm %s473_s25, 256 }
  0x16   : > { %p305_p2 = scmp.ne.s32.totalorder %s473_s25, %s304_s30  ;;  %p306_p3 = pneg %p477_p13 }
  0x17   : > { %s309_s4 = scalar_lea.hbm %s557_s0, 512  ;;  %p310_p5 = scmp.lt.s32.totalorder %s473_s25, %s557_s0 }
  0x18   : > { %p307_p4 = pnand %p306_p3, %p305_p2  ;;  %p311_p8 = scmp.lt.s32.totalorder %s309_s4, %s304_s30 }
  0x1a   : > { %p308_p7 = pneg %p307_p4  ;;  %p312_p10 = por %p311_p8, %p310_p5 }
  0x1c   : > { %p313_p9 = pnand %p312_p10, %p308_p7 }
  0x1e   : > { %316 = shalt.err (!%p313_p9)
}
  0x1f   : > { %s317_s13 = scalar_lea.vmem %s481_s27, 256  ;;  %s398_s14 = smov [#allocation2]  }
  0x20   : > { %p318_p0 = scmp.ne.s32.totalorder %s481_s27, %s317_s13  ;;  %s322_s16 = sshll.u32 %s398_s14, 4  ;;  %s323_s16 = int_to_ptr.vmem [resolvable:$false] %s322_s16 }
  0x21   : > { %s324_s20 = scalar_lea.vmem %s323_s16, 512  ;;  %p325_p4 = scmp.lt.s32.totalorder %s481_s27, %s323_s16 }
  0x22   : > { %p320_p1 = pnand %p318_p0, %p306_p3  ;;  %p326_p12 = scmp.lt.s32.totalorder %s324_s20, %s317_s13 }
  0x24   : > { %p321_p2 = pneg %p320_p1  ;;  %p327_p11 = por %p326_p12, %p325_p4 }
  0x26   : > { %p328_p6 = pnand %p327_p11, %p321_p2 }
  0x28   : > { %331 = shalt.err (!%p328_p6)
}
  0x29   : > { %263 = dma.hbm_to_vmem [thread:$0]  (!%p477_p13), %s473_s25, 256, %s481_s27, %s88_s29  }
  0x2a   : > { %p566_p9 = scmp.lt.s32.totalorder %s396_s9, 3  ;;  %p567_p7 = scmp.ge.s32.totalorder %s396_s9, 1 }
  0x2c   : > { %p105_p0 = pnand %p567_p7, %p566_p9 }
  0x2d   : > { %s508_s21 = sand.u32 (!%p105_p0), 1, %s388_s7   ;;  %p568_p6 = scmp.ne.s32.totalorder (!%p105_p0), %s562_s17, 0 }
  0x2e   : > { %108 = sbr.rel (%p105_p0) target bundleno = 234 (0xea), region = 24  ;;  %s245_s22 = sshll.u32 (!%p105_p0), %s508_s21, 4 }
  0x2f   : > { %s111_s23 = scalar_lea.sflag (!%p105_p0), [#allocation3], %s508_s21  ;;  %s114_s24 = scalar_lea.vmem (!%p105_p0), [#allocation2], %s245_s22 }
  0x33   : > { %375 = dma.done.wait (%p568_p6), %s111_s23, 256  }
  0x34   : > { %377 = vsyncadd (%p568_p6), %s111_s23, 4294967040  ;;  %v133_v0 = vld [vmem:[%s114_s24] sm:$0xff]  ;;  %v134_v1 = vld [vmem:[%s114_s24 + $0x8] sm:$0xff]  ;;  %s255_s17 = sshll.u32 %s431_s10, 8  ;;  %s132_s25 = scalar_lea.vmem [#allocation5], %s245_s22 }
  0x35   : > { %v135_v2 = vmax.f32 %v133_v0, %v134_v1  ;;  %v138_v3 = vmin.f32 %v133_v0, %v134_v1  ;;  %s168_s26 = sshll.u32 %s132_s25, 4  ;;  %s520_s29 = scalar_lea.hbm %s558_s1, %s255_s17  ;;  %s169_s26 = int_to_ptr.vmem [resolvable:$true] %s168_s26 }
  0x36   : > { %s154_s30 = scalar_lea.sflag [#allocation4], %s508_s21  ;;  %s332_s2 = scalar_lea.vmem %s169_s26, 256 }
  0x37   : > { %136 = vmax.xlane.f32.xlu0 %v135_v2  ;;  %p333_p11 = scmp.ne.s32.totalorder %s169_s26, %s332_s2  ;;  %p569_p12 = scmp.ne.s32.totalorder %s563_s18, 0 }
  0x38   : > { %s399_s10 = smov [#allocation5]  }
  0x39   : > { %p334_p13 = pnand %p333_p11, %p569_p12  ;;  %s336_s3 = sshll.u32 %s399_s10, 4  ;;  %s337_s3 = int_to_ptr.vmem [resolvable:$false] %s336_s3 }
  0x3a   : > { %s338_s4 = scalar_lea.vmem %s337_s3, 512  ;;  %p339_p3 = scmp.lt.s32.totalorder %s169_s26, %s337_s3 }
  0x3b   : > { %139 = vmin.xlane.f32.xlu0 %v138_v3  ;;  %p335_p1 = pneg %p334_p13  ;;  %p340_p5 = scmp.lt.s32.totalorder %s338_s4, %s332_s2 }
  0x3d   : > { %p341_p8 = por %p340_p5, %p339_p3 }
  0x3f   : > { %p342_p10 = pnand %p341_p8, %p335_p1 }
  0xc0   : > { %v137_v4 = vpop.xlane.xlu0 %136 }
  0xc4   : > { %v140_v5 = vpop.xlane.xlu0 %139 }
  0xc5   : > { %v141_v6 = vsub.f32 %v137_v4, %v140_v5  ;;  %v145_v10 = vsub.f32 %v133_v0, %v140_v5  ;;  %v146_v11 = vsub.f32 %v134_v1, %v140_v5 }
  0xc7   : > { %v142_v7 = vadd.f32 1e-10, %v141_v6 }
  0xc9   : > { %302 = vrcp.f32 %v142_v7 }
  0xd6   : > { %v303_v8 = vpop.eup %302 }
  0xd7   : > { %v144_v9 = vmul.f32 2.0, %v303_v8 }
  0xd9   : > { %v147_v12 = vmul.f32 %v145_v10, %v144_v9  ;;  %v148_v13 = vmul.f32 %v146_v11, %v144_v9 }
  0xdb   : > { %v247_v14 = vadd.f32 -1.0, %v147_v12  ;;  %v248_v15 = vadd.f32 -1.0, %v148_v13 }
  0xdd   : > { %151 = vst [vmem:[%s132_s25] sm:$0xff] %v247_v14  ;;  %152 = vst [vmem:[%s132_s25 + $0x8] sm:$0xff] %v248_v15 }
  0xde   : > { %345 = shalt.err (!%p342_p10)
}
  0xdf   : > { %s346_s5 = scalar_lea.hbm %s520_s29, 256  ;;  %s350_s14 = scalar_lea.hbm %s558_s1, 512 }
  0xe0   : > { %p347_p2 = scmp.ne.s32.totalorder %s520_s29, %s346_s5  ;;  %p351_p7 = scmp.lt.s32.totalorder %s520_s29, %s558_s1 }
  0xe1   : > { %p352_p0 = scmp.lt.s32.totalorder %s350_s14, %s346_s5 }
  0xe2   : > { %p348_p4 = pnand %p347_p2, %p569_p12 }
  0xe3   : > { %p353_p6 = por %p352_p0, %p351_p7 }
  0xe4   : > { %p349_p9 = pneg %p348_p4 }
  0xe6   : > { %p354_p11 = pnand %p353_p6, %p349_p9 }
  0xe8   : > { %357 = shalt.err (!%p354_p11)
}
  0xe9   : > { %258 = dma.vmem_to_hbm [thread:$0]  (%p569_p12), %s169_s26, 256, %s520_s29, %s154_s30  }
  0xea PF: > { %s180_s21 = sand.u32 1, %s384_s6   ;;  %p570_p13 = scmp.ne.s32.totalorder %s564_s19, 0 }
  0xeb   : > { %p571_p1 = scmp.ge.s32.totalorder %s396_s9, 2  ;;  %s181_s22 = scalar_lea.sflag [#allocation4], %s180_s21 }
  0xed   : > { %p265_p3 = pnand %p571_p1, %p570_p13 }
  0xef   : > { %p266_p5 = pneg %p265_p3 }
  0xf1   : > { %379 = dma.done.wait (%p266_p5), %s181_s22, 256  }
  0xf2   : > { %381 = vsyncadd (%p266_p5), %s181_s22, 4294967040  ;;  %p14_p8 = scmp.ge.s32.totalorder %s435_s12, 4   ;;  %s572_s6 = smov %s388_s7 }
  0xf3   : > { %s573_s7 = smov %s392_s8  ;;  %s574_s8 = smov %s447_s15 }
  0xf4   : > { %s575_s9 = smov %s435_s12  ;;  %16 = sbr.rel (!%p14_p8) target bundleno = 5 (0x5), region = 69 }
  0xf9   :  { %186 = vsyncpa [#allocation3], 1 }
  0xfa   :  { %188 = vsyncpa [#allocation3 + $0x1], 1 }
  0xfb   :  { %189 = vsyncpa [#allocation4], 1 }
  0xfc   :  { %191 = vsyncpa [#allocation4 + $0x1], 1 }

</bundles_post_ra>
